<compile_context>
chip_gen: v5e
topology: v5e:2x2
jax: 0.10.0
libtpu: 0.0.40
codegen_flags: <defaults>
</compile_context>

<pallas_src>
import jax
import jax.numpy as jnp
from jax import lax
from jax.experimental import pallas as pl
from jax.experimental.pallas import tpu as pltpu


def _make_warp_kernel(C, Hp, W, TP):
    def kernel(src_ref, coord_ref, out_ref):
        # src_ref  : (1, C*Hp, W)  full (H-padded) source, resident across p axis
        # coord_ref: (1, 2, TP)    absolute sampling coords (y, x) for this tile
        # out_ref  : (1, C, TP)
        y = coord_ref[0, 0:1, :]                       # (1, TP)
        x = coord_ref[0, 1:2, :]                       # (1, TP)
        y0f = jnp.floor(y)
        x0f = jnp.floor(x)
        wy = y - y0f                                   # fractional parts
        wx = x - x0f
        y0 = y0f.astype(jnp.int32)
        x0 = x0f.astype(jnp.int32)

        # x-direction weights, (W, TP): single nested select per axis.
        # OOB taps never match an in-range index -> zeros padding for free.
        widx = lax.broadcasted_iota(jnp.int32, (W, TP), 0)
        u = widx - x0
        ct = jnp.where(u == 0, 1.0 - wx, jnp.where(u == 1, wx, 0.0))

        # y-direction weights, (Hp, TP); padded rows (>= H) never match.
        hidx = lax.broadcasted_iota(jnp.int32, (Hp, TP), 0)
        v = hidx - y0
        rt = jnp.where(v == 0, 1.0 - wy, jnp.where(v == 1, wy, 0.0))

        # Stage 1: one MXU pass for all channels: (C*Hp, W) @ (W, TP).
        cols = jnp.dot(src_ref[0], ct, preferred_element_type=jnp.float32)
        # Stage 2: per-channel y-reduce.  Hp % 8 == 0 and TP % 128 == 0, so this
        # reshape does not cross an (8,128) tile and materializes no copy.
        cols = cols.reshape(C, Hp, TP)
        # Single lane-dense store of the whole (C, TP) tile.
        out_ref[0] = jnp.sum(cols * rt[None, :, :], axis=1).astype(out_ref.dtype)

    return kernel


def _pick_tile(hwp, n):
    """hwp is a multiple of 128.  Pick the largest lane-dense tile dividing hwp,
    then shrink it so the grid has enough programs to feed both v7x TensorCores
    and the DMA pipeline.  The 1024 cap keeps CT/RT/cols VMEM comfortable under
    v5e's 16 MiB scoped-VMEM default."""
    tp = 128
    for cand in (1024, 512, 256, 128):
        if hwp % cand == 0:
            tp = cand
            break
    while tp > 256 and n * (hwp // tp) < 4:
        tp //= 2
    if tp > 128 and n * (hwp // tp) < 2:
        tp //= 2
    return tp


def spatial_transformer_warp(src_nchw, flow_n2hw):
    """Bilinear warp of src by a pixel-space displacement field flow
    (VoxelMorph SpatialTransformer / grid_sample zeros + align_corners=True)."""
    N, C, H, W = src_nchw.shape
    assert flow_n2hw.shape == (N, 2, H, W)
    HW = H * W
    Hp = ((H + 7) // 8) * 8            # sublane-pad H (zero rows, RT never selects them)
    HWp = ((HW + 127) // 128) * 128    # lane-pad flattened pixel axis
    TP = _pick_tile(HWp, N)

    src = src_nchw.astype(jnp.float32)
    if Hp != H:
        src = jnp.pad(src, ((0, 0), (0, 0), (0, Hp - H), (0, 0)))
    src_flat = src.reshape(N, C * Hp, W)

    # Absolute sampling coordinates (identity grid + flow), computed once here so
    # the kernel avoids int div/mod by W on the critical path.
    ii = jnp.arange(H, dtype=jnp.float32)[:, None]
    jj = jnp.arange(W, dtype=jnp.float32)[None, :]
    flow = flow_n2hw.astype(jnp.float32)
    coords = jnp.stack([ii[None] + flow[:, 0], jj[None] + flow[:, 1]], axis=1)
    coords = coords.reshape(N, 2, HW)
    if HWp != HW:
        # Padded pixels get an always-OOB coordinate -> exact zeros, sliced off below.
        coords = jnp.pad(coords, ((0, 0), (0, 0), (0, HWp - HW)),
                         constant_values=-10.0)

    kernel = _make_warp_kernel(C, Hp, W, TP)

    cost = pl.CostEstimate(
        flops=2 * N * C * Hp * W * HWp,
        transcendentals=0,
        bytes_accessed=4 * (N * C * Hp * W + N * 2 * HWp + N * C * HWp),
    )

    out = pl.pallas_call(
        kernel,
        out_shape=jax.ShapeDtypeStruct((N, C, HWp), jnp.float32),
        grid_spec=pltpu.PrefetchScalarGridSpec(
            num_scalar_prefetch=0,
            grid=(N, HWp // TP),
            in_specs=[
                # whole (H-padded, channel-flattened) source; same block across p
                pl.BlockSpec((1, C * Hp, W), lambda n, p: (n, 0, 0)),
                # sampling coordinates sliced per output-pixel tile
                pl.BlockSpec((1, 2, TP), lambda n, p: (n, 0, p)),
            ],
            out_specs=pl.BlockSpec((1, C, TP), lambda n, p: (n, 0, p)),
        ),
        compiler_params=pltpu.CompilerParams(
            dimension_semantics=("parallel", "parallel"),
        ),
        cost_estimate=cost,
    )(src_flat, coords)

    return out[:, :, :HW].reshape(N, C, H, W)


def warp_reference(src, flow):
    """Pure-JAX reference of grid_sample(..., align_corners=True, padding='zeros')."""
    N, C, H, W = src.shape
    ii, jj = jnp.meshgrid(jnp.arange(H), jnp.arange(W), indexing="ij")
    y = ii[None].astype(jnp.float32) + flow[:, 0]
    x = jj[None].astype(jnp.float32) + flow[:, 1]
    y0 = jnp.floor(y)
    x0 = jnp.floor(x)
    wy = y - y0
    wx = x - x0
    out = jnp.zeros_like(src)
    n_idx = jnp.arange(N)[:, None, None, None]
    c_idx = jnp.arange(C)[None, :, None, None]
    for dy in (0, 1):
        for dx in (0, 1):
            yi = y0.astype(jnp.int32) + dy
            xi = x0.astype(jnp.int32) + dx
            w = (wy if dy else (1.0 - wy)) * (wx if dx else (1.0 - wx))
            valid = (yi >= 0) & (yi < H) & (xi >= 0) & (xi < W)
            yc = jnp.clip(yi, 0, H - 1)
            xc = jnp.clip(xi, 0, W - 1)
            vals = src[n_idx, c_idx, yc[:, None], xc[:, None]]
            out = out + (w * valid)[:, None] * vals
    return out


if __name__ == "__main__":
    key = jax.random.PRNGKey(0)

    cases = [
        (2, 2, 16, 16),   # image_size = [16, 16] -> HWp=256, TP=256, grid (2, 1)
        (1, 2, 32, 32),   # TP shrinks to 256 -> grid (1, 4): feeds both v7x TCs
        (1, 3, 20, 24),   # H 20->24 sublane pad, HW 480->512 lane pad, grid (1, 2)
    ]

    for (N, C, H, W) in cases:
        key, k1, k2 = jax.random.split(key, 3)
        src = jax.random.normal(k1, (N, C, H, W), dtype=jnp.float32)
        # small smooth-ish displacement field (pixel units), some samples go OOB
        flow = 1.5 * jax.random.normal(k2, (N, 2, H, W), dtype=jnp.float32)

        out = spatial_transformer_warp(src, flow)
        out = jax.block_until_ready(out)

        ref = warp_reference(src, flow)
        assert out.shape == (N, C, H, W)
        err = float(jnp.max(jnp.abs(out - ref)))
        assert jnp.allclose(out, ref, atol=1e-4, rtol=1e-4), (N, C, H, W, err)

    print("KERNEL_OK")
</pallas_src>

<mosaic_0001>
module attributes {stable_mosaic.version = 11 : i64} {
  func.func @kernel(%arg0: i32, %arg1: i32, %arg2: memref<1x32x16xf32, #tpu.memory_space<vmem>>, %arg3: memref<1x2x256xf32, #tpu.memory_space<vmem>>, %arg4: memref<1x2x256xf32, #tpu.memory_space<vmem>>) attributes {dimension_semantics = [#tpu.dimension_semantics<parallel>, #tpu.dimension_semantics<parallel>], iteration_bounds = array<i64: 2, 1>, scalar_prefetch = 0 : i64, scratch_operands = 0 : i64, tpu.core_type = #tpu.core_type<tc>, window_params = [{transform_indices = @transform_0, window_bounds = array<i64: 1, 32, 16>}, {transform_indices = @transform_1, window_bounds = array<i64: 1, 2, 256>}, {transform_indices = @transform_2, window_bounds = array<i64: 1, 2, 256>}]} {
    %c0 = arith.constant 0 : index
    %c0_0 = arith.constant 0 : index
    %c0_1 = arith.constant 0 : index
    %0 = vector.load %arg3[%c0, %c0_0, %c0_1] : memref<1x2x256xf32, #tpu.memory_space<vmem>>, vector<1x1x256xf32>
    %1 = vector.shape_cast %0 : vector<1x1x256xf32> to vector<1x256xf32>
    %c0_2 = arith.constant 0 : index
    %c1 = arith.constant 1 : index
    %c0_3 = arith.constant 0 : index
    %2 = vector.load %arg3[%c0_2, %c1, %c0_3] : memref<1x2x256xf32, #tpu.memory_space<vmem>>, vector<1x1x256xf32>
    %3 = vector.shape_cast %2 : vector<1x1x256xf32> to vector<1x256xf32>
    %4 = math.floor %1 : vector<1x256xf32>
    %5 = math.floor %3 : vector<1x256xf32>
    %6 = arith.subf %1, %4 : vector<1x256xf32>
    %7 = arith.subf %3, %5 : vector<1x256xf32>
    %8 = arith.fptosi %4 : vector<1x256xf32> to vector<1x256xi32>
    %9 = arith.fptosi %5 : vector<1x256xf32> to vector<1x256xi32>
    %10 = tpu.iota {dimensions = array<i32: 0>} : vector<16x256xi32>
    %11 = vector.broadcast %9 : vector<1x256xi32> to vector<16x256xi32>
    %12 = arith.subi %10, %11 : vector<16x256xi32>
    %c0_i32 = arith.constant 0 : i32
    %13 = vector.broadcast %c0_i32 : i32 to vector<16x256xi32>
    %14 = arith.cmpi eq, %12, %13 : vector<16x256xi32>
    %cst = arith.constant 1.000000e+00 : f32
    %15 = vector.broadcast %cst : f32 to vector<1x256xf32>
    %16 = arith.subf %15, %7 : vector<1x256xf32>
    %c1_i32 = arith.constant 1 : i32
    %17 = vector.broadcast %c1_i32 : i32 to vector<16x256xi32>
    %18 = arith.cmpi eq, %12, %17 : vector<16x256xi32>
    %cst_4 = arith.constant 0.000000e+00 : f32
    %19 = vector.shape_cast %7 : vector<1x256xf32> to vector<1x256xf32>
    %20 = vector.broadcast %19 : vector<1x256xf32> to vector<16x256xf32>
    %21 = vector.broadcast %cst_4 : f32 to vector<16x256xf32>
    %22 = arith.select %18, %20, %21 : vector<16x256xi1>, vector<16x256xf32>
    %23 = vector.shape_cast %16 : vector<1x256xf32> to vector<1x256xf32>
    %24 = vector.broadcast %23 : vector<1x256xf32> to vector<16x256xf32>
    %25 = arith.select %14, %24, %22 : vector<16x256xi1>, vector<16x256xf32>
    %26 = tpu.iota {dimensions = array<i32: 0>} : vector<16x256xi32>
    %27 = vector.broadcast %8 : vector<1x256xi32> to vector<16x256xi32>
    %28 = arith.subi %26, %27 : vector<16x256xi32>
    %c0_i32_5 = arith.constant 0 : i32
    %29 = vector.broadcast %c0_i32_5 : i32 to vector<16x256xi32>
    %30 = arith.cmpi eq, %28, %29 : vector<16x256xi32>
    %cst_6 = arith.constant 1.000000e+00 : f32
    %31 = vector.broadcast %cst_6 : f32 to vector<1x256xf32>
    %32 = arith.subf %31, %6 : vector<1x256xf32>
    %c1_i32_7 = arith.constant 1 : i32
    %33 = vector.broadcast %c1_i32_7 : i32 to vector<16x256xi32>
    %34 = arith.cmpi eq, %28, %33 : vector<16x256xi32>
    %cst_8 = arith.constant 0.000000e+00 : f32
    %35 = vector.shape_cast %6 : vector<1x256xf32> to vector<1x256xf32>
    %36 = vector.broadcast %35 : vector<1x256xf32> to vector<16x256xf32>
    %37 = vector.broadcast %cst_8 : f32 to vector<16x256xf32>
    %38 = arith.select %34, %36, %37 : vector<16x256xi1>, vector<16x256xf32>
    %39 = vector.shape_cast %32 : vector<1x256xf32> to vector<1x256xf32>
    %40 = vector.broadcast %39 : vector<1x256xf32> to vector<16x256xf32>
    %41 = arith.select %30, %40, %38 : vector<16x256xi1>, vector<16x256xf32>
    %c0_9 = arith.constant 0 : index
    %c0_10 = arith.constant 0 : index
    %c0_11 = arith.constant 0 : index
    %42 = vector.load %arg2[%c0_9, %c0_10, %c0_11] : memref<1x32x16xf32, #tpu.memory_space<vmem>>, vector<1x32x16xf32>
    %43 = vector.shape_cast %42 : vector<1x32x16xf32> to vector<32x16xf32>
    %cst_12 = arith.constant dense<0.000000e+00> : vector<32x256xf32>
    %44 = tpu.matmul %43, %25, %cst_12 {dimension_numbers = #tpu.dot_dimension_numbers<[1], [0], [0], [1], [0, 0, 1, 1], [], []>} : vector<32x16xf32>, vector<16x256xf32>, vector<32x256xf32> -> vector<32x256xf32>
    %45 = vector.shape_cast %44 : vector<32x256xf32> to vector<2x16x256xf32>
    %46 = vector.shape_cast %41 : vector<16x256xf32> to vector<1x16x256xf32>
    %47 = vector.broadcast %46 : vector<1x16x256xf32> to vector<2x16x256xf32>
    %48 = arith.mulf %45, %47 : vector<2x16x256xf32>
    %cst_13 = arith.constant dense<0.000000e+00> : vector<2x256xf32>
    %49 = vector.multi_reduction <add>, %48, %cst_13 [1] : vector<2x16x256xf32> to vector<2x256xf32>
    %c0_14 = arith.constant 0 : index
    %c0_15 = arith.constant 0 : index
    %c0_16 = arith.constant 0 : index
    %50 = vector.load %arg4[%c0_14, %c0_15, %c0_16] : memref<1x2x256xf32, #tpu.memory_space<vmem>>, vector<1x2x256xf32>
    %51 = vector.shape_cast %50 : vector<1x2x256xf32> to vector<2x256xf32>
    %52 = vector.shape_cast %49 : vector<2x256xf32> to vector<1x2x256xf32>
    tpu.vector_store %arg4[%c0_14, %c0_15, %c0_16], %52 {strides = array<i32>} : memref<1x2x256xf32, #tpu.memory_space<vmem>>, vector<1x2x256xf32>,
    return
  }
  func.func @transform_0(%arg0: i32, %arg1: i32) -> (i32, i32, i32) {
    %c0_i32 = arith.constant 0 : i32
    %c0_i32_0 = arith.constant 0 : i32
    %c0_i32_1 = arith.constant 0 : i32
    return %arg0, %c0_i32, %c0_i32_0 : i32, i32, i32
  }
  func.func @transform_1(%arg0: i32, %arg1: i32) -> (i32, i32, i32) {
    %c0_i32 = arith.constant 0 : i32
    %c0_i32_0 = arith.constant 0 : i32
    return %arg0, %c0_i32, %arg1 : i32, i32, i32
  }
  func.func @transform_2(%arg0: i32, %arg1: i32) -> (i32, i32, i32) {
    %c0_i32 = arith.constant 0 : i32
    %c0_i32_0 = arith.constant 0 : i32
    return %arg0, %c0_i32, %arg1 : i32, i32, i32
  }
}

</mosaic_0001>

<bundles_post_ra>
// kernel: tpu_custom_call.1
= control target key start
LH: loop header
LB: loop body
LE: loop exit
PB: predicated region body
PF: predicated region fallthrough
CT: control target
= control target key end

     0   :  { %7 = vsyncpa [#allocation3], 0  ;;  %s831_s0 = inlined_call_operand.vmem [shape: f32[2,32,16], index: 0, kind: input, shape index: {}]   ;;  %s832_s1 = inlined_call_operand.vmem [shape: f32[2,2,256], index: 1, kind: input, shape index: {}]   ;;  %s833_s2 = inlined_call_operand.hbm [shape: f32[2,2,256], index: 2, kind: output, shape index: {}]  }
   0x1   :  { %9 = vsyncpa [#allocation3 + $0x1], 0  ;;  %s698_s9 = smov 0   ;;  %s700_s10 = smov 0  }
   0x2   :  { %s702_s11 = smov 0   ;;  %s704_s12 = smov 0  }
   0x3   :  { %s706_s13 = smov 0   ;;  %s708_s14 = smov 0  }
   0x4 LB: > { %s513_s15 = sadd.s32 4294967295, %s681_s14   ;;  %s514_s16 = sadd.s32 4294967294, %s681_s14   ;;  %s681_s14 = sphi %s708_s14, %s15_s14   ;;  %s677_s13 = sphi %s706_s13, %s840_s13   ;;  %s673_s12 = sphi %s704_s12, %s839_s12   ;;  %s669_s11 = sphi %s702_s11, %s838_s11   ;;  %s665_s10 = sphi %s700_s10, %s837_s10   ;;  %s661_s9 = sphi %s698_s9, %s836_s9  }
   0x5   : > { %s27_s17 = sadd.s32 1, %s677_s13  ;;  %s90_s18 = sadd.s32 1, %s669_s11 }
   0x6   : > { %p29_p0 = scmp.ge.s32.totalorder %s27_s17, 2  ;;  %p100_p1 = scmp.ne.s32.totalorder %s669_s11, %s665_s10 }
   0x7   : > { %p101_p2 = scmp.eq.s32.totalorder %s513_s15, 1  ;;  %p106_p3 = scmp.ne.s32.totalorder %s665_s10, %s661_s9 }
   0x8   : > { %s842_s17 = smov (%p29_p0, %s27_s17), 0  ;;  %p107_p5 = scmp.eq.s32.totalorder %s514_s16, 1 }
   0x9   : > { %p738_p4 = por %p101_p2, %p100_p1  ;;  %s85_s20 = ssub.s32 %s677_s13, %s842_s17 }
   0xa   : > { %p517_p6 = scmp.ge.s32.totalorder %s681_s14, 1  ;;  %p88_p7 = scmp.eq.s32.totalorder %s85_s20, 0 }
   0xb   : > { %p745_p8 = por %p107_p5, %p106_p3  ;;  %p146_p9 = scmp.lt.s32.totalorder %s681_s14, 3 }
   0xc   : > { %s751_s22 = scalar_select %p88_p7, %s669_s11, %s90_s18  }
   0xd   : > { %p147_p10 = pnand %p517_p6, %p146_p9 }
   0xe   : > { %p177_p11 = scmp.lt.s32.totalorder (!%p147_p10), %s673_s12, 1  ;;  %s174_s4 = sand.u32 (!%p147_p10), 1, %s665_s10  }
   0xf   : > { %150 = sbr.rel (%p147_p10) target bundleno = 209 (0xd1), region = 28  ;;  %s518_s5 = sshll.u32 (!%p147_p10), %s174_s4, 2 }
  0x10   : > { %s539_s6 = sshll.u32 (!%p147_p10), %s673_s12, 2  ;;  %s176_s16 = scalar_lea.vmem (!%p147_p10), [#allocation2], %s518_s5 }
  0x11   : > { %s420_s15 = scalar_lea.hbm (!%p147_p10), %s833_s2, %s539_s6  ;;  %s422_s18 = sshll.u32 (!%p147_p10), %s176_s16, 4  ;;  %s423_s18 = int_to_ptr.vmem [resolvable:$true] %s422_s18 }
  0x12   : > { %s407_s20 = scalar_lea.sflag (!%p147_p10), [#allocation3], %s174_s4 }
  0x14   : > { %v202_v0 = vlaneseq  ;;  %s755_s23 = scalar_select %p177_p11, %s673_s12, 1  ;;  %vm275_vm8 = vcmask 130048  }
  0x15   : > { %s424_s12 = sshll.u32 %s420_s15, 4  ;;  %s425_s12 = int_to_ptr.hbm [resolvable:$true] %s424_s12 }
  0x16   : > { %s538_s24 = sshll.u32 %s755_s23, 2  ;;  %v763_v1 = vshrl.u32 %v202_v0, 7  ;;  %s537_s28 = sshll.u32 %s755_s23, 5 }
  0x17   : > { %s761_s27 = scalar_lea.vmem %s832_s1, %s538_s24  ;;  %s181_s3 = scalar_lea.vmem %s831_s0, %s537_s28 }
  0x18   : > { %v523_v2 = vld [vmem:[%s761_s27 + $0x1] ss:$2 sm:$0x3]  ;;  %v767_v6 = vadd.s32 8, %v763_v1  ;;  %v273_v26 = vld [vmem:[%s181_s3 + $0x10] sm:$0xff]  ;;  %v272_v28 = vld [vmem:[%s181_s3 + $0x8] sm:$0xff] }
  0x19   : > { %v197_v3 = vfloor.f32 %v523_v2  ;;  %v271_v25 = vld [vmem:[%s181_s3] sm:$0xff]  ;;  %v274_v29 = vld [vmem:[%s181_s3 + $0x18] sm:$0xff]  ;;  %s617_s23 = sshra.s32 %s425_s12, 4  ;;  %s618_s23 = int_to_ptr.hbm [resolvable:$true] %s617_s23 }
  0x1a   : > { %v193_v30 = vld [vmem:[%s761_s27] ss:$2 sm:$0x3]  ;;  %s619_s24 = scalar_lea.hbm %s618_s23, 4  ;;  %s623_s27 = scalar_lea.hbm %s833_s2, 8 }
  0x1b   : > { %v199_v4 = vsub.f32 %v523_v2, %v197_v3  ;;  %v547_v5 = vcvt.f32.s32 %v197_v3  ;;  %v196_v31 = vfloor.f32 %v193_v30  ;;  %p620_p12 = scmp.ne.s32.totalorder %s618_s23, %s619_s24  ;;  %p624_p1 = scmp.lt.s32.totalorder %s618_s23, %s833_s2 }
  0x1c   : > { %p625_p2 = scmp.lt.s32.totalorder %s623_s27, %s619_s24 }
  0x1d   : > { %v205_v7 = vperm.slane %v547_v5, 0  ;;  %v215_v8 = vsub.f32 1.0, %v199_v4  ;;  %v206_v9 = vperm.slane %v547_v5, 1  ;;  %v221_v10 = vperm.slane %v199_v4, 0  ;;  %p621_p13 = pnand %p620_p12, %p738_p4 }
  0x1e   : > { %v222_v11 = vperm.slane %v199_v4, 1  ;;  %v545_v32 = vcvt.f32.s32 %v196_v31  ;;  %v198_v34 = vsub.f32 %v193_v30, %v196_v31  ;;  %p626_p3 = por %p625_p2, %p624_p1 }
  0x1f   : > { %v209_v12 = vsub.s32 %v767_v6, %v205_v7  ;;  %v230_v13 = vperm.slane %v215_v8, 0  ;;  %v210_v14 = vsub.s32 %v767_v6, %v206_v9  ;;  %v231_v15 = vperm.slane %v215_v8, 1  ;;  %p622_p0 = pneg %p621_p13 }
  0x20   : > { %v207_v16 = vsub.s32 %v763_v1, %v205_v7  ;;  %v208_v17 = vsub.s32 %v763_v1, %v206_v9  ;;  %v238_v33 = vperm.slane %v545_v32, 0  ;;  %v239_v36 = vperm.slane %v545_v32, 1 }
  0x21   : > { %vm213_vm0 = vcmp.eq.s32.totalorder %v209_v12, 0  ;;  %vm218_vm1 = vcmp.eq.s32.totalorder %v209_v12, 1  ;;  %vm214_vm2 = vcmp.eq.s32.totalorder %v210_v14, 0  ;;  %vm219_vm3 = vcmp.eq.s32.totalorder %v210_v14, 1  ;;  %p627_p5 = pnand %p626_p3, %p622_p0 }
  0x22   : > { %v227_v18 = vsel %vm218_vm1, %v221_v10, 0.0  ;;  %v228_v19 = vsel %vm219_vm3, %v222_v11, 0.0  ;;  %vm211_vm4 = vcmp.eq.s32.totalorder %v207_v16, 0  ;;  %vm216_vm5 = vcmp.eq.s32.totalorder %v207_v16, 1 }
  0x23   : > { %v236_v20 = vsel %vm213_vm0, %v230_v13, %v227_v18  ;;  %v237_v21 = vsel %vm214_vm2, %v231_v15, %v228_v19  ;;  %v225_v22 = vsel %vm216_vm5, %v221_v10, 0.0  ;;  %vm212_vm6 = vcmp.eq.s32.totalorder %v208_v17, 0 }
  0x24   : > { %302 = vmatpush.msra.mxu0 %v236_v20  ;;  %540 = vmatpush.msra.mxu2 %v236_v20  ;;  %v234_v23 = vsel %vm211_vm4, %v230_v13, %v225_v22  ;;  %vm217_vm7 = vcmp.eq.s32.totalorder %v208_v17, 1  ;;  %v240_v35 = vsub.s32 %v763_v1, %v238_v33  ;;  %v254_v37 = vperm.slane %v198_v34, 0 }
  0x25   : > { %331 = vmatpush.msra.mxu1 %v237_v21  ;;  %542 = vmatpush.msra.mxu3 %v237_v21  ;;  %v226_v24 = vsel %vm217_vm7, %v222_v11, 0.0  ;;  %v242_v38 = vsub.s32 %v767_v6, %v238_v33  ;;  %v248_v39 = vsub.f32 1.0, %v198_v34  ;;  %v241_v40 = vsub.s32 %v763_v1, %v239_v36 }
  0x26   : > { %303 = vmatpush.msra.mxu0 %v234_v23  ;;  %541 = vmatpush.msra.mxu2 %v234_v23  ;;  %v235_v27 = vsel %vm212_vm6, %v231_v15, %v226_v24  ;;  %vm249_vm9 = vcmp.eq.s32.totalorder %v240_v35, 1  ;;  %v243_v41 = vsub.s32 %v767_v6, %v239_v36  ;;  %vm244_vm10 = vcmp.eq.s32.totalorder %v240_v35, 0 }
  0x27   : > { %332 = vmatpush.msra.mxu1 %v235_v27  ;;  %543 = vmatpush.msra.mxu3 %v235_v27  ;;  %v263_v42 = vperm.slane %v248_v39, 0  ;;  %v258_v43 = vsel %vm249_vm9, %v254_v37, 0.0  ;;  %v255_v45 = vperm.slane %v198_v34, 1  ;;  %vm251_vm11 = vcmp.eq.s32.totalorder %v242_v38, 1 }
  0x28   : > { %524 = vmatmul.msk.f32.vlgmr.msra.gmra.mxu0 %vm275_vm8, %v271_v25  ;;  %526 = vmatmul.msk.f32.vlgmr.msra.gmra.mxu2 %vm275_vm8, %v273_v26  ;;  %vm250_vm12 = vcmp.eq.s32.totalorder %v241_v40, 1  ;;  %vm252_vm13 = vcmp.eq.s32.totalorder %v243_v41, 1  ;;  %v264_v48 = vperm.slane %v248_v39, 1  ;;  %vm246_vm14 = vcmp.eq.s32.totalorder %v242_v38, 0 }
  0x29   : > { %528 = vmatmul.msk.f32.vlgmr.msra.gmra.mxu1 %vm275_vm8, %v271_v25  ;;  %530 = vmatmul.msk.f32.vlgmr.msra.gmra.mxu3 %vm275_vm8, %v273_v26  ;;  %v267_v47 = vsel %vm244_vm10, %v263_v42, %v258_v43  ;;  %v260_v49 = vsel %vm251_vm11, %v254_v37, 0.0  ;;  %vm245_vm15 = vcmp.eq.s32.totalorder %v241_v40, 0  ;;  %v259_v50 = vsel %vm250_vm12, %v255_v45, 0.0 }
  0x2a   : > { %vm247_vm0 = vcmp.eq.s32.totalorder %v243_v41, 0  ;;  %v261_v51 = vsel %vm252_vm13, %v255_v45, 0.0  ;;  %v269_v53 = vsel %vm246_vm14, %v263_v42, %v260_v49  ;;  %v268_v55 = vsel %vm245_vm15, %v264_v48, %v259_v50 }
  0x2b   : > { %v270_v57 = vsel %vm247_vm0, %v264_v48, %v261_v51  ;;  %vm388_vm1 = vcmask 1041408   ;;  %vm396_vm2 = vcmask 1041409   ;;  %vm398_vm3 = vcmask 1043459  }
  0x2c   : > { %vm400_vm4 = vcmask 1045509   ;;  %vm402_vm5 = vcmask 1047559  }
  0x30   : > { %525 = vmatmul.msk.f32.gmra.mxu0 %vm275_vm8, %v272_v28  ;;  %527 = vmatmul.msk.f32.gmra.mxu2 %vm275_vm8, %v274_v29 }
  0x31   : > { %529 = vmatmul.msk.f32.gmra.mxu1 %vm275_vm8, %v272_v28  ;;  %531 = vmatmul.msk.f32.gmra.mxu3 %vm275_vm8, %v274_v29 }
  0xa5   : > { %v305_v44 = vpop.f32.mrf.mxu0 }
  0xa6   : > { %v334_v46 = vpop.f32.mrf.mxu1  ;;  %v346_v54 = vmul.f32 %v305_v44, %v267_v47 }
  0xa7   : > { %v347_v58 = vmul.f32 %v334_v46, %v268_v55 }
  0xab   : > { %v311_v52 = vpop.f32.mrf.mxu2 }
  0xac   : > { %v340_v56 = vpop.f32.mrf.mxu3  ;;  %v350_v4 = vmul.f32 %v311_v52, %v267_v47 }
  0xad   : > { %v308_v59 = vpop.f32.mrf.mxu0  ;;  %v351_v7 = vmul.f32 %v340_v56, %v268_v55 }
  0xae   : > { %v348_v60 = vmul.f32 %v308_v59, %v269_v53  ;;  %v337_v61 = vpop.f32.mrf.mxu1 }
  0xaf   : > { %v349_v62 = vmul.f32 %v337_v61, %v270_v57 }
  0xb0   : > { %v354_v63 = vadd.f32 %v348_v60, %v346_v54 }
  0xb1   : > { %v361_v0 = vadd.f32 %v349_v62, %v347_v58 }
  0xb2   : > { %v355_v1 = vrot.slane %v354_v63, 4 }
  0xb3   : > { %v362_v2 = vrot.slane %v361_v0, 4  ;;  %v314_v3 = vpop.f32.mrf.mxu2 }
  0xb4   : > { %v352_v5 = vmul.f32 %v314_v3, %v269_v53  ;;  %v343_v6 = vpop.f32.mrf.mxu3  ;;  %v356_v11 = vadd.f32 %v355_v1, %v354_v63 }
  0xb5   : > { %v363_v8 = vadd.f32 %v362_v2, %v361_v0  ;;  %v353_v9 = vmul.f32 %v343_v6, %v270_v57 }
  0xb6   : > { %v368_v10 = vadd.f32 %v352_v5, %v350_v4  ;;  %v357_v18 = vrot.slane %v356_v11, 2 }
  0xb7   : > { %v364_v12 = vrot.slane %v363_v8, 2  ;;  %v375_v13 = vadd.f32 %v353_v9, %v351_v7 }
  0xb8   : > { %v369_v14 = vrot.slane %v368_v10, 4  ;;  %v358_v24 = vadd.f32 %v357_v18, %v356_v11 }
  0xb9   : > { %v365_v15 = vadd.f32 %v364_v12, %v363_v8  ;;  %v376_v16 = vrot.slane %v375_v13, 4 }
  0xba   : > { %v370_v17 = vadd.f32 %v369_v14, %v368_v10  ;;  %v359_v29 = vrot.slane %v358_v24, 1 }
  0xbb   : > { %v377_v19 = vadd.f32 %v376_v16, %v375_v13  ;;  %v366_v21 = vrot.slane %v365_v15, 1 }
  0xbc   : > { %v371_v20 = vrot.slane %v370_v17, 2  ;;  %v360_v34 = vadd.f32 %v359_v29, %v358_v24 }
  0xbd   : > { %v378_v22 = vrot.slane %v377_v19, 2  ;;  %v367_v26 = vadd.f32 %v366_v21, %v365_v15 }
  0xbe   : > { %v372_v23 = vadd.f32 %v371_v20, %v370_v17 }
  0xbf   : > { %v379_v25 = vadd.f32 %v378_v22, %v377_v19  ;;  %v386_v31 = vrot.slane %v367_v26, 6 }
  0xc0   : > { %v373_v27 = vrot.slane %v372_v23, 1 }
  0xc1   : > { %v380_v28 = vrot.slane %v379_v25, 1  ;;  %v389_v37 = vsel %vm388_vm1, %v360_v34, %v386_v31 }
  0xc2   : > { %v374_v32 = vadd.f32 %v373_v27, %v372_v23 }
  0xc3   : > { %v381_v30 = vadd.f32 %v380_v28, %v379_v25 }
  0xc5   : > { %v387_v33 = vrot.slane %v381_v30, 6 }
  0xc7   : > { %v390_v35 = vsel %vm388_vm1, %v374_v32, %v387_v33 }
  0xc8   : > { %v395_v36 = vrot.slane %v390_v35, 7 }
  0xca   : > { %v397_v38 = vsel %vm396_vm2, %v395_v36, %v389_v37 }
  0xcb   : > { %v399_v39 = vsel %vm398_vm3, %v395_v36, %v397_v38 }
  0xcc   : > { %v401_v40 = vsel %vm400_vm4, %v395_v36, %v399_v39 }
  0xcd   : > { %v403_v41 = vsel %vm402_vm5, %v395_v36, %v401_v40 }
  0xce   : > { %405 = vst [vmem:[%s176_s16] sm:$0xf] %v403_v41 }
  0xcf   : > { %630 = shalt.err (!%p627_p5)
}
  0xd0   : > { %548 = dma.vmem_to_hbm [thread:$0]  (%p738_p4), %s423_s18, 64, %s425_s12, %s407_s20  }
  0xd1 PF: > { %p554_p6 = scmp.ge.s32.totalorder %s681_s14, 2  ;;  %s436_s30 = sand.u32 1, %s661_s9  }
  0xd2   : > { %s437_s3 = scalar_lea.sflag [#allocation3], %s436_s30 }
  0xd3   : > { %p551_p7 = pnand %p554_p6, %p745_p8 }
  0xd5   : > { %p552_p9 = pneg %p551_p7 }
  0xd7   : > { %656 = dma.done.wait (%p552_p9), %s437_s3, 64  }
  0xd8   : > { %658 = vsyncadd (%p552_p9), %s437_s3, 4294967232  ;;  %s15_s14 = sadd.s32 1, %s681_s14   ;;  %s836_s9 = smov %s665_s10 }
  0xd9   : > { %p12_p10 = scmp.ge.s32.totalorder %s15_s14, 4   ;;  %s837_s10 = smov %s669_s11 }
  0xda   : > { %s838_s11 = smov %s751_s22  ;;  %s839_s12 = smov %s677_s13 }
  0xdb   : > { %s840_s13 = smov %s842_s17  ;;  %14 = sbr.rel (!%p12_p10) target bundleno = 4 (0x4), region = 67 }
  0xe0   :  { %443 = vsyncpa [#allocation3], 1 }
  0xe1   :  { %445 = vsyncpa [#allocation3 + $0x1], 1 }

</bundles_post_ra>
